<compile_context>
chip_gen: v7x
topology: tpu7x:2x2x1
jax: 0.10.0
libtpu: 0.0.40
codegen_flags: <defaults>
</compile_context>

<pallas_src>
import functools

import numpy as np

import jax
import jax.numpy as jnp
from jax import lax
from jax.experimental import pallas as pl
from jax.experimental.pallas import tpu as pltpu


# 3x3 taps in PyTorch kernel order t = kh*3 + kw, offsets (dh, dw) = (kh-1, kw-1).
_TAPS = tuple((kh - 1, kw - 1) for kh in range(3) for kw in range(3))


# -----------------------------------------------------------------------------
# Exact (erf-based) GELU matching PyTorch nn.GELU().  erf uses the
# Abramowitz&Stegun 7.1.26 rational approximation (max abs err ~1.5e-7).  The
# divide is an EUP approximate reciprocal refined with one Newton step, so it
# stays numerically at f32 accuracy while avoiding a full-precision divide.
# -----------------------------------------------------------------------------
def _gelu_exact(x):
    z = x * jnp.float32(0.7071067811865476)          # x / sqrt(2)
    az = jnp.abs(z)
    d = 1.0 + jnp.float32(0.3275911) * az
    t = pl.reciprocal(d, approx=True)
    t = t * (2.0 - d * t)                            # one Newton refinement
    poly = ((((jnp.float32(1.061405429) * t
               + jnp.float32(-1.453152027)) * t
              + jnp.float32(1.421413741)) * t
             + jnp.float32(-0.284496736)) * t
            + jnp.float32(0.254829592)) * t
    erf_abs = 1.0 - poly * jnp.exp(-az * az)
    erf_z = jnp.where(z >= 0.0, erf_abs, -erf_abs)
    return 0.5 * x * (1.0 + erf_z)


# -----------------------------------------------------------------------------
# pltpu.roll sign-convention probe (run once, eagerly, outside jit).  The fused
# kernel uses lane rotations for the 3x3 spatial taps; this pins the rotation
# direction to jnp.roll semantics regardless of the tpu.rotate convention.
# -----------------------------------------------------------------------------
@functools.cache
def _roll_matches_jnp():
    def probe(x_ref, o_ref):
        o_ref[...] = pltpu.roll(x_ref[...], 1, 1)

    x = jnp.tile(jnp.arange(128, dtype=jnp.float32), (8, 1))
    y = pl.pallas_call(
        probe, out_shape=jax.ShapeDtypeStruct((8, 128), jnp.float32))(x)
    first = float(y[0, 0])
    if first == 127.0:
        return True          # result[p] = x[(p - shift) % n]   (jnp.roll)
    if first == 1.0:
        return False         # result[p] = x[(p + shift) % n]
    raise RuntimeError(f"unexpected pltpu.roll behaviour (probe got {first})")


# -----------------------------------------------------------------------------
# Fused EBlock kernel factory.
# -----------------------------------------------------------------------------
def _make_eblock_kernel(C, W, L, num_res, roll_like_jnp):
    """C = channels, W = image width, L = batch_tile * H * W (lane length)."""

    def shift_amount(s):
        # Rotation amount so that shifted[:, p] == src[:, (p + s) % L].
        return (-s) % L if roll_like_jnp else s % L

    def kernel(x_ref, w0_ref, w1_ref, w2_ref, wl_ref, b_ref, m_ref,
               o_ref, feat_ref, bank_ref):
        conv_w = (w0_ref, w1_ref, w2_ref)

        def write_bank_group(g, src):
            # Write the 9 pre-shifted, PRE-MASKED copies of a C-row channel
            # group into bank rows [g*9C, (g+1)*9C).  Masking at write time
            # keeps the downstream MXU dots free of post-dot VPU fixups.
            base = g * 9 * C
            for t, (dh, dw) in enumerate(_TAPS):
                s = dh * W + dw
                row = base + t * C
                if s == 0:
                    bank_ref[row:row + C, :] = src
                else:
                    shifted = pltpu.roll(src, shift_amount(s), 1)
                    bank_ref[row:row + C, :] = shifted * m_ref[t:t + 1, :]

        # Block input lives in feat rows [0, C); rows [C, 4C) and the bank are
        # always written before being read, so no zero-initialisation needed.
        feat_ref[0:C, :] = x_ref[0].astype(jnp.float32)

        def block_body(blk, carry):
            b_blk = b_ref[blk]                         # (4C, 1)
            write_bank_group(0, feat_ref[0:C, :])
            # ---- three 3x3 growth convs: ONE dot each against the bank ----
            for c in range(3):
                cin = (1 + c) * C
                w_c = conv_w[c][blk]                   # (C, 9*cin)
                acc = jnp.dot(w_c, bank_ref[0:9 * cin, :],
                              preferred_element_type=jnp.float32)
                out = _gelu_exact(acc + b_blk[c * C:(c + 1) * C])
                feat_ref[(1 + c) * C:(2 + c) * C, :] = out
                if c < 2:                              # conv2 out only feeds LFF
                    write_bank_group(1 + c, out)
            # ---- 1x1 LFF conv + residual -> next block input ----
            full = feat_ref[...]                       # (4C, L)
            y = jnp.dot(wl_ref[blk], full, preferred_element_type=jnp.float32)
            feat_ref[0:C, :] = y + b_blk[3 * C:4 * C] + full[0:C, :]
            return carry

        lax.fori_loop(0, num_res, block_body, 0)
        o_ref[0] = feat_ref[0:C, :].astype(o_ref.dtype)

    return kernel


def eblock_forward(x_nchw, packed, batch_tile=None):
    """x_nchw: (N, C, H, W) float32 (PyTorch layout). packed: pack_eblock_params()."""
    N, C, H, W = x_nchw.shape
    HW = H * W
    num_res = packed["w0"].shape[0]

    if batch_tile is None:
        # Keep the grid >= 2 steps when possible so both v7x TensorCores get
        # work; on single-TC chips (v5e/v6e) the extra step costs ~0.35 us.
        batch_tile = N // 2 if (N % 2 == 0 and N >= 2) else 1
    assert N % batch_tile == 0
    G = N // batch_tile
    L = batch_tile * HW
    assert L % 128 == 0, "flattened batch*spatial axis should fill TPU lanes"

    kernel = _make_eblock_kernel(C, W, L, num_res, _roll_matches_jnp())

    # Pack batch_tile images into the lane axis of each grid step.
    x = (x_nchw.reshape(G, batch_tile, C, HW)
               .transpose(0, 2, 1, 3).reshape(G, C, L))
    masks = jnp.tile(packed["masks"], (1, batch_tile))        # (9, L)

    def whole(arr):
        if arr.ndim == 2:
            return pl.BlockSpec(arr.shape, lambda n: (0, 0))
        return pl.BlockSpec(arr.shape, lambda n: (0, 0, 0))

    out = pl.pallas_call(
        kernel,
        out_shape=jax.ShapeDtypeStruct((G, C, L), x_nchw.dtype),
        grid=(G,),
        in_specs=[
            pl.BlockSpec((1, C, L), lambda n: (n, 0, 0)),
            whole(packed["w0"]), whole(packed["w1"]), whole(packed["w2"]),
            whole(packed["wl"]), whole(packed["b"]), whole(masks),
        ],
        out_specs=pl.BlockSpec((1, C, L), lambda n: (n, 0, 0)),
        scratch_shapes=[
            pltpu.VMEM((4 * C, L), jnp.float32),        # running feature slab
            pltpu.VMEM((27 * C, L), jnp.float32),       # rolled, pre-masked bank
        ],
        compiler_params=pltpu.CompilerParams(
            dimension_semantics=("parallel",)),   # v7x: one grid step per TC
    )(x, packed["w0"], packed["w1"], packed["w2"],
      packed["wl"], packed["b"], masks)

    return (out.reshape(G, C, batch_tile, HW)
               .transpose(0, 2, 1, 3).reshape(N, C, H, W))


# -----------------------------------------------------------------------------
# Parameter init (PyTorch Conv2d default ranges, OIHW layout) and packing into
# the kernel's bank-matched (group, tap, in-channel) column ordering.
# -----------------------------------------------------------------------------
def _init_conv(key, K, cin, cout):
    kw, kb = jax.random.split(key)
    bound = float(1.0 / (cin * K * K) ** 0.5)
    w = jax.random.uniform(kw, (cout, cin, K, K), jnp.float32, -bound, bound)
    b = jax.random.uniform(kb, (cout,), jnp.float32, -bound, bound)
    return w, b


def init_eblock_params(key, C, num_res=8, n_conv=3):
    params = []
    for _ in range(num_res):
        blk = {"convs": []}
        for c in range(n_conv):
            key, sub = jax.random.split(key)
            blk["convs"].append(_init_conv(sub, 3, (1 + c) * C, C))
        key, sub = jax.random.split(key)
        blk["lff"] = _init_conv(sub, 1, (1 + n_conv) * C, C)
        params.append(blk)
    return params


def _build_tap_masks(H, W):
    m = np.zeros((9, H, W), np.float32)
    for t, (dh, dw) in enumerate(_TAPS):
        rok = ((np.arange(H) + dh >= 0) & (np.arange(H) + dh < H))
        cok = ((np.arange(W) + dw >= 0) & (np.arange(W) + dw < W))
        m[t] = rok[:, None].astype(np.float32) * cok[None, :].astype(np.float32)
    return jnp.asarray(m.reshape(9, H * W))


def pack_eblock_params(params, H, W):
    C = params[0]["convs"][0][0].shape[0]
    w_banked = [[], [], []]
    wl_list, b_list = [], []
    for blk in params:
        for c, (w, b) in enumerate(blk["convs"]):
            g = 1 + c                                 # number of C-row groups
            # (Cout, g*C, 3, 3) -> columns ordered as bank rows:
            #   col = grp*(9*C) + tap*C + in_chan_within_group
            wp = w.reshape(C, g, C, 9)                # (o, grp, i, t)
            wp = jnp.transpose(wp, (0, 1, 3, 2))      # (o, grp, t, i)
            w_banked[c].append(wp.reshape(C, g * 9 * C))
        wl, bl = blk["lff"]
        wl_list.append(wl.reshape(C, wl.shape[1]))
        b_list.append(jnp.stack([b for (_, b) in blk["convs"]] + [bl]))
    b_packed = jnp.stack(b_list)                      # (R, 4, C)
    R = b_packed.shape[0]
    return {
        "w0": jnp.stack(w_banked[0]),                 # (R, C, 9C)
        "w1": jnp.stack(w_banked[1]),                 # (R, C, 18C)
        "w2": jnp.stack(w_banked[2]),                 # (R, C, 27C)
        "wl": jnp.stack(wl_list),                     # (R, C, 4C)
        "b": b_packed.reshape(R, 4 * C, 1),           # (R, 4C, 1)
        "masks": _build_tap_masks(H, W),              # (9, H*W)
    }


# -----------------------------------------------------------------------------
# Pure-XLA reference of the PyTorch module (numerical cross-check).
# -----------------------------------------------------------------------------
def eblock_reference(x, params):
    dn = ("NCHW", "OIHW", "NCHW")
    hi = lax.Precision.HIGHEST
    act = x
    for blk in params:
        feat = act
        for (w, b) in blk["convs"]:
            out = lax.conv_general_dilated(feat, w, (1, 1), "SAME",
                                           dimension_numbers=dn, precision=hi)
            out = jax.nn.gelu(out + b.reshape(1, -1, 1, 1), approximate=False)
            feat = jnp.concatenate([feat, out], axis=1)
        wl, bl = blk["lff"]
        y = lax.conv_general_dilated(feat, wl, (1, 1), "SAME",
                                     dimension_numbers=dn, precision=hi)
        act = y + bl.reshape(1, -1, 1, 1) + act
    return act


if __name__ == "__main__":
    N, C, H, W = 2, 4, 16, 16
    NUM_RES = 8

    key = jax.random.PRNGKey(0)
    k_x, k_p = jax.random.split(key)

    x = jax.random.normal(k_x, (N, C, H, W), jnp.float32)   # PyTorch NCHW layout
    params = init_eblock_params(k_p, C, num_res=NUM_RES)
    packed = pack_eblock_params(params, H, W)

    _roll_matches_jnp()          # pin the rotate convention outside of jit

    fwd = jax.jit(eblock_forward, static_argnames=("batch_tile",))

    # Default path (heuristic batch_tile keeps grid length 2 for v7x).
    y = jax.block_until_ready(fwd(x, packed))
    assert y.shape == (N, C, H, W), y.shape
    assert bool(jnp.all(jnp.isfinite(y)))

    y_ref = jax.block_until_ready(jax.jit(eblock_reference)(x, params))
    assert bool(jnp.allclose(y, y_ref, atol=5e-3, rtol=5e-3)), \
        float(jnp.max(jnp.abs(y - y_ref)))

    # Lane-batched path (batch_tile > 1): both images share one grid step;
    # validates that cross-image roll wrap is fully covered by the masks.
    y2 = jax.block_until_ready(fwd(x, packed, batch_tile=2))
    assert bool(jnp.allclose(y2, y_ref, atol=5e-3, rtol=5e-3)), \
        float(jnp.max(jnp.abs(y2 - y_ref)))

    print("KERNEL_OK")
</pallas_src>

<mosaic_0001>
module attributes {stable_mosaic.version = 11 : i64} {
  func.func @probe(%arg0: memref<8x128xf32, #tpu.memory_space<vmem>>, %arg1: memref<8x128xf32, #tpu.memory_space<vmem>>) attributes {dimension_semantics = [], scalar_prefetch = 0 : i64, scratch_operands = 0 : i64, tpu.core_type = #tpu.core_type<tc>} {
    %c0 = arith.constant 0 : index
    %c0_0 = arith.constant 0 : index
    %0 = vector.load %arg0[%c0, %c0_0] : memref<8x128xf32, #tpu.memory_space<vmem>>, vector<8x128xf32>
    %c1_i32 = arith.constant 1 : i32
    %1 = tpu.dynamic_rotate %0 by %c1_i32 dim 1 : vector<8x128xf32>, i32 -> vector<8x128xf32>
    %c0_1 = arith.constant 0 : index
    %c0_2 = arith.constant 0 : index
    %2 = vector.load %arg1[%c0_1, %c0_2] : memref<8x128xf32, #tpu.memory_space<vmem>>, vector<8x128xf32>
    tpu.vector_store %arg1[%c0_1, %c0_2], %1 {strides = array<i32>} : memref<8x128xf32, #tpu.memory_space<vmem>>, vector<8x128xf32>,
    return
  }
}

</mosaic_0001>

<bundles_post_ra>
// kernel: tpu_custom_call.1
= control target key start
LH: loop header
LB: loop body
LE: loop exit
PB: predicated region body
PF: predicated region fallthrough
CT: control target
= control target key end

     0   :  { %6 = vsyncpa [#allocation3], 0  ;;  %s128_s0 = inlined_call_operand.hbm [shape: f32[8,128], index: 0, kind: input, shape index: {}]   ;;  %s129_s1 = inlined_call_operand.hbm [shape: f32[8,128], index: 1, kind: output, shape index: {}]  }
   0x1   :  { %7 = vsyncpa [#allocation4], 0  ;;  %s91_s6 = smov [#allocation2]   ;;  %s43_s10 = scalar_lea.hbm %s128_s0, 128 }
   0x2   :  { %s14_s7 = sshll.u32 %s91_s6, 4  ;;  %p44_p0 = scmp.ne.s32.totalorder %s128_s0, %s43_s10  ;;  %s15_s7 = int_to_ptr.vmem [resolvable:$true] %s14_s7 }
   0x3   :  { %p47_p1 = scmp.lt.u32.totalorder %s43_s10, %s128_s0 }
   0x5   :  { %p49_p2 = pnand %p47_p1, %p44_p0 }
   0x7   :  { %52 = shalt.err (!%p49_p2)
}
   0x8   :  { %s53_s15 = scalar_lea.vmem %s15_s7, 128  ;;  %p58_p4 = scmp.lt.s32.totalorder %s15_s7, %s15_s7 }
   0x9   :  { %p54_p3 = scmp.ne.s32.totalorder %s15_s7, %s53_s15  ;;  %p59_p5 = scmp.lt.s32.totalorder %s53_s15, %s53_s15 }
   0xb   :  { %p60_p6 = por %p59_p5, %p58_p4 }
   0xd   :  { %p61_p7 = pnand %p60_p6, %p54_p3 }
   0xf   :  { %64 = shalt.err (!%p61_p7)
}
  0x10   :  { %17 = dma.hbm_to_vmem [thread:$0]  %s128_s0, 128, %s15_s7, [#allocation3]  }
  0x11   :  { %87 = dma.done.wait [#allocation3], 128  }
  0x12   :  { %88 = vsyncadd [#allocation3], 4294967168  ;;  %v21_v0 = vld [vmem:[#allocation2] sm:$0xff]  ;;  %s92_s18 = smov 1   ;;  %s93_s19 = smov [#allocation5]  }
  0x13   :  { %22 = vrot.lane.b32.xlu0 %v21_v0, %s92_s18  ;;  %s31_s20 = sshll.u32 %s93_s19, 4  ;;  %s32_s20 = int_to_ptr.vmem [resolvable:$true] %s31_s20 }
  0x14   :  { %s65_s21 = scalar_lea.vmem %s32_s20, 128  ;;  %p70_p9 = scmp.lt.s32.totalorder %s32_s20, %s32_s20 }
  0x15   :  { %p66_p8 = scmp.ne.s32.totalorder %s32_s20, %s65_s21  ;;  %p71_p10 = scmp.lt.s32.totalorder %s65_s21, %s65_s21 }
  0x17   :  { %p72_p11 = por %p71_p10, %p70_p9 }
  0x19   :  { %p73_p12 = pnand %p72_p11, %p66_p8 }
  0x85   :  { %v23_v1 = vpop.permute.xlu0 %22 }
  0x86   :  { %24 = vst [vmem:[#allocation5] sm:$0xff] %v23_v1 }
  0x87   :  { %76 = shalt.err (!%p73_p12)
}
  0x88   :  { %s77_s0 = scalar_lea.hbm %s129_s1, 128 }
  0x89   :  { %p78_p13 = scmp.ne.s32.totalorder %s129_s1, %s77_s0  ;;  %p81_p0 = scmp.lt.u32.totalorder %s77_s0, %s129_s1 }
  0x8b   :  { %p83_p1 = pnand %p81_p0, %p78_p13 }
  0x8d   :  { %86 = shalt.err (!%p83_p1)
}
  0x8e   :  { %34 = dma.vmem_to_hbm [thread:$0]  %s32_s20, 128, %s129_s1, [#allocation4]  }
  0x8f   :  { %89 = dma.done.wait [#allocation4], 128  }
  0x90   :  { %90 = vsyncadd [#allocation4], 4294967168 }
  0x91   :  { %38 = vsyncpa [#allocation3], 1 }
  0x92   :  { %39 = vsyncpa [#allocation4], 1 }

</bundles_post_ra>
